<compile_context>
chip_gen: v7x
topology: tpu7x:2x2x1
jax: 0.10.0
libtpu: 0.0.40
codegen_flags: <defaults>
</compile_context>

<pallas_src>
import functools

import jax
import jax.numpy as jnp
from jax.experimental import pallas as pl
from jax.experimental.pallas import tpu as pltpu

_LANES = 128  # lane-dense output width (one full vreg row)


def _leaky_relu(x, slope=0.2):
    return jnp.where(x > 0, x, slope * x)


def _sigmoid(x):
    # exp -> EUP, approximate reciprocal -> EUP; keeps the divide off the VPU.
    return pl.reciprocal(1.0 + jnp.exp(-x), approx=True)


def progan_disc_kernel(z_ref, w1_ref, b1_ref, wc_ref, bc_ref, out_ref, *,
                       batch, embed_dim):
    B = batch
    E = embed_dim

    # Shared trunk on the stacked batch: one MXU matmul instead of three.
    h = jnp.dot(z_ref[...], w1_ref[...],
                preferred_element_type=jnp.float32) + b1_ref[...]   # [3B, H]
    h = _leaky_relu(h)

    # Fused heads: embedding (cols 0..E-1) + realness (col E) in one matmul.
    head = jnp.dot(h, wc_ref[...],
                   preferred_element_type=jnp.float32) + bc_ref[...]  # [3B, E+1]

    emb = _leaky_relu(head[:, :E])                                   # [3B, E]
    real = _sigmoid(head[:, E:E + 1])                                # [3B, 1]

    ei = emb[0:B]
    ej = emb[B:2 * B]
    ek = emb[2 * B:3 * B]
    # Row-wise dot products <ei,ej> (sim) and <ei,ek> (dis), stacked on sublanes.
    sd = jnp.sum(jnp.concatenate([ei * ej, ei * ek], axis=0),
                 axis=-1, keepdims=True)                             # [2B, 1]
    sd = _sigmoid(sd)
    sd = jnp.concatenate([sd, jnp.zeros((B, 1), jnp.float32)], axis=0)  # [3B, 1]

    # Single lane-dense output slab -> one unmasked store, one output DMA.
    lane_idx = jax.lax.broadcasted_iota(jnp.int32, (3 * B, _LANES), 1)
    out_ref[...] = jnp.where(lane_idx == 0, real,
                             jnp.where(lane_idx == 1, sd, 0.0))


def pack_params(params):
    """Fuse the realness head into the embedding head (done once, host-side)."""
    wc = jnp.concatenate([params["we"], params["wr"]], axis=1)  # [H, E+1]
    bc = jnp.concatenate([params["be"], params["br"]], axis=1)  # [1, E+1]
    return params["w1"], params["b1"], wc, bc


def progan_discriminator_forward(zi, zj, zk, w1, b1, wc, bc):
    B, D = zi.shape
    H = w1.shape[1]
    E = wc.shape[1] - 1
    assert zj.shape == (B, D) and zk.shape == (B, D)
    assert w1.shape == (D, H) and b1.shape == (1, H)
    assert wc.shape == (H, E + 1) and bc.shape == (1, E + 1)

    z = jnp.concatenate([zi, zj, zk], axis=0)  # [3B, D]

    kernel = functools.partial(progan_disc_kernel, batch=B, embed_dim=E)
    vmem = pl.BlockSpec(memory_space=pltpu.MemorySpace.VMEM)
    packed = pl.pallas_call(
        kernel,
        out_shape=jax.ShapeDtypeStruct((3 * B, _LANES), jnp.float32),
        in_specs=[vmem] * 5,
        out_specs=vmem,
    )(z, w1, b1, wc, bc)

    real = packed[:, 0:1]          # [3B, 1]
    sim = packed[0:B, 1:2]         # [B, 1]
    dis = packed[B:2 * B, 1:2]     # [B, 1]
    return real, sim, dis


def make_params(key, input_dim, hidden_dim, embed_dim):
    ks = jax.random.split(key, 6)
    # PyTorch nn.Linear stores W as [out, in]; we keep [in, out] for x @ W.
    def init(k, fan_in, shape):
        bound = 1.0 / jnp.sqrt(fan_in)
        return jax.random.uniform(k, shape, jnp.float32, -bound, bound)

    return {
        "w1": init(ks[0], input_dim, (input_dim, hidden_dim)),
        "b1": init(ks[1], input_dim, (1, hidden_dim)),
        "wr": init(ks[2], hidden_dim, (hidden_dim, 1)),
        "br": init(ks[3], hidden_dim, (1, 1)),
        "we": init(ks[4], hidden_dim, (hidden_dim, embed_dim)),
        "be": init(ks[5], hidden_dim, (1, embed_dim)),
    }


def reference_forward(zi, zj, zk, p):
    def lin(x):
        return jax.nn.leaky_relu(x @ p["w1"] + p["b1"], 0.2)

    def realness(h):
        return jax.nn.sigmoid(h @ p["wr"] + p["br"])

    def embed(h):
        return jax.nn.leaky_relu(h @ p["we"] + p["be"], 0.2)

    hi, hj, hk = lin(zi), lin(zj), lin(zk)
    real = jnp.concatenate([realness(hi), realness(hj), realness(hk)], axis=0)
    ei, ej, ek = embed(hi), embed(hj), embed(hk)
    sim = jax.nn.sigmoid(jnp.sum(ei * ej, axis=-1, keepdims=True))
    dis = jax.nn.sigmoid(jnp.sum(ei * ek, axis=-1, keepdims=True))
    return real, sim, dis


if __name__ == "__main__":
    B, INPUT_DIM, HIDDEN_DIM, EMBED_DIM = 8, 32, 64, 16

    key = jax.random.PRNGKey(0)
    k_zi, k_zj, k_zk, k_p = jax.random.split(key, 4)
    zi = jax.random.normal(k_zi, (B, INPUT_DIM), jnp.float32)
    zj = jax.random.normal(k_zj, (B, INPUT_DIM), jnp.float32)
    zk = jax.random.normal(k_zk, (B, INPUT_DIM), jnp.float32)
    params = make_params(k_p, INPUT_DIM, HIDDEN_DIM, EMBED_DIM)
    w1, b1, wc, bc = pack_params(params)  # fused heads, built once host-side

    fwd = jax.jit(progan_discriminator_forward)
    real, sim, dis = fwd(zi, zj, zk, w1, b1, wc, bc)
    jax.block_until_ready((real, sim, dis))

    real_r, sim_r, dis_r = reference_forward(zi, zj, zk, params)
    assert real.shape == (3 * B, 1) and sim.shape == (B, 1) and dis.shape == (B, 1)
    # Tolerance accounts for the EUP approximate reciprocal in the sigmoid.
    assert jnp.allclose(real, real_r, atol=2e-3)
    assert jnp.allclose(sim, sim_r, atol=2e-3)
    assert jnp.allclose(dis, dis_r, atol=2e-3)

    print("KERNEL_OK")
</pallas_src>

<mosaic_0001>
module attributes {stable_mosaic.version = 11 : i64} {
  func.func @progan_disc_kernel(%arg0: memref<24x32xf32, #tpu.memory_space<vmem>>, %arg1: memref<32x64xf32, #tpu.memory_space<vmem>>, %arg2: memref<1x64xf32, #tpu.memory_space<vmem>>, %arg3: memref<64x17xf32, #tpu.memory_space<vmem>>, %arg4: memref<1x17xf32, #tpu.memory_space<vmem>>, %arg5: memref<24x128xf32, #tpu.memory_space<vmem>>) attributes {dimension_semantics = [], scalar_prefetch = 0 : i64, scratch_operands = 0 : i64, tpu.core_type = #tpu.core_type<tc>} {
    %c0 = arith.constant 0 : index
    %c0_0 = arith.constant 0 : index
    %0 = vector.load %arg0[%c0, %c0_0] : memref<24x32xf32, #tpu.memory_space<vmem>>, vector<24x32xf32>
    %c0_1 = arith.constant 0 : index
    %c0_2 = arith.constant 0 : index
    %1 = vector.load %arg1[%c0_1, %c0_2] : memref<32x64xf32, #tpu.memory_space<vmem>>, vector<32x64xf32>
    %cst = arith.constant dense<0.000000e+00> : vector<24x64xf32>
    %2 = tpu.matmul %0, %1, %cst {dimension_numbers = #tpu.dot_dimension_numbers<[1], [0], [0], [1], [0, 0, 1, 1], [], []>} : vector<24x32xf32>, vector<32x64xf32>, vector<24x64xf32> -> vector<24x64xf32>
    %c0_3 = arith.constant 0 : index
    %c0_4 = arith.constant 0 : index
    %3 = vector.load %arg2[%c0_3, %c0_4] : memref<1x64xf32, #tpu.memory_space<vmem>>, vector<1x64xf32>
    %4 = vector.broadcast %3 : vector<1x64xf32> to vector<24x64xf32>
    %5 = arith.addf %2, %4 : vector<24x64xf32>
    %cst_5 = arith.constant 0.000000e+00 : f32
    %6 = vector.broadcast %cst_5 : f32 to vector<24x64xf32>
    %7 = arith.cmpf ogt, %5, %6 : vector<24x64xf32>
    %cst_6 = arith.constant 2.000000e-01 : f32
    %8 = vector.broadcast %cst_6 : f32 to vector<24x64xf32>
    %9 = arith.mulf %8, %5 : vector<24x64xf32>
    %10 = arith.select %7, %5, %9 : vector<24x64xi1>, vector<24x64xf32>
    %c0_7 = arith.constant 0 : index
    %c0_8 = arith.constant 0 : index
    %11 = vector.load %arg3[%c0_7, %c0_8] : memref<64x17xf32, #tpu.memory_space<vmem>>, vector<64x17xf32>
    %cst_9 = arith.constant dense<0.000000e+00> : vector<24x17xf32>
    %12 = tpu.matmul %10, %11, %cst_9 {dimension_numbers = #tpu.dot_dimension_numbers<[1], [0], [0], [1], [0, 0, 1, 1], [], []>} : vector<24x64xf32>, vector<64x17xf32>, vector<24x17xf32> -> vector<24x17xf32>
    %c0_10 = arith.constant 0 : index
    %c0_11 = arith.constant 0 : index
    %13 = vector.load %arg4[%c0_10, %c0_11] : memref<1x17xf32, #tpu.memory_space<vmem>>, vector<1x17xf32>
    %14 = vector.broadcast %13 : vector<1x17xf32> to vector<24x17xf32>
    %15 = arith.addf %12, %14 : vector<24x17xf32>
    %16 = vector.extract_strided_slice %15 {offsets = [0, 0], sizes = [24, 16], strides = [1, 1]} : vector<24x17xf32> to vector<24x16xf32>
    %cst_12 = arith.constant 0.000000e+00 : f32
    %17 = vector.broadcast %cst_12 : f32 to vector<24x16xf32>
    %18 = arith.cmpf ogt, %16, %17 : vector<24x16xf32>
    %cst_13 = arith.constant 2.000000e-01 : f32
    %19 = vector.broadcast %cst_13 : f32 to vector<24x16xf32>
    %20 = arith.mulf %19, %16 : vector<24x16xf32>
    %21 = arith.select %18, %16, %20 : vector<24x16xi1>, vector<24x16xf32>
    %22 = vector.extract_strided_slice %15 {offsets = [0, 16], sizes = [24, 1], strides = [1, 1]} : vector<24x17xf32> to vector<24x1xf32>
    %cst_14 = arith.constant 0.000000e+00 : f32
    %23 = vector.broadcast %cst_14 : f32 to vector<24x1xf32>
    %24 = arith.subf %23, %22 : vector<24x1xf32>
    %25 = math.exp %24 : vector<24x1xf32>
    %cst_15 = arith.constant 1.000000e+00 : f32
    %26 = vector.broadcast %cst_15 : f32 to vector<24x1xf32>
    %27 = arith.addf %26, %25 : vector<24x1xf32>
    %28 = tpu.reciprocal %27 {approx = true} : vector<24x1xf32> -> vector<24x1xf32>
    %29 = vector.extract_strided_slice %21 {offsets = [0, 0], sizes = [8, 16], strides = [1, 1]} : vector<24x16xf32> to vector<8x16xf32>
    %30 = vector.extract_strided_slice %21 {offsets = [8, 0], sizes = [8, 16], strides = [1, 1]} : vector<24x16xf32> to vector<8x16xf32>
    %31 = vector.extract_strided_slice %21 {offsets = [16, 0], sizes = [8, 16], strides = [1, 1]} : vector<24x16xf32> to vector<8x16xf32>
    %32 = arith.mulf %29, %30 : vector<8x16xf32>
    %33 = arith.mulf %29, %31 : vector<8x16xf32>
    %34 = tpu.concatenate %32, %33 in 0 : vector<8x16xf32>, vector<8x16xf32> -> vector<16x16xf32>
    %cst_16 = arith.constant dense<0.000000e+00> : vector<16xf32>
    %35 = vector.multi_reduction <add>, %34, %cst_16 [1] : vector<16x16xf32> to vector<16xf32>
    %36 = vector.shape_cast %35 : vector<16xf32> to vector<16x1xf32>
    %cst_17 = arith.constant 0.000000e+00 : f32
    %37 = vector.broadcast %cst_17 : f32 to vector<16x1xf32>
    %38 = arith.subf %37, %36 : vector<16x1xf32>
    %39 = math.exp %38 : vector<16x1xf32>
    %cst_18 = arith.constant 1.000000e+00 : f32
    %40 = vector.broadcast %cst_18 : f32 to vector<16x1xf32>
    %41 = arith.addf %40, %39 : vector<16x1xf32>
    %42 = tpu.reciprocal %41 {approx = true} : vector<16x1xf32> -> vector<16x1xf32>
    %cst_19 = arith.constant 0.000000e+00 : f32
    %43 = vector.broadcast %cst_19 : f32 to vector<8x1xf32>
    %44 = tpu.concatenate %42, %43 in 0 : vector<16x1xf32>, vector<8x1xf32> -> vector<24x1xf32>
    %45 = tpu.iota {dimensions = array<i32: 1>} : vector<24x128xi32>
    %c0_i32 = arith.constant 0 : i32
    %46 = vector.broadcast %c0_i32 : i32 to vector<24x128xi32>
    %47 = arith.cmpi eq, %45, %46 : vector<24x128xi32>
    %c1_i32 = arith.constant 1 : i32
    %48 = vector.broadcast %c1_i32 : i32 to vector<24x128xi32>
    %49 = arith.cmpi eq, %45, %48 : vector<24x128xi32>
    %cst_20 = arith.constant 0.000000e+00 : f32
    %50 = vector.shape_cast %44 : vector<24x1xf32> to vector<24x1xf32>
    %51 = vector.broadcast %50 : vector<24x1xf32> to vector<24x128xf32>
    %52 = vector.broadcast %cst_20 : f32 to vector<24x128xf32>
    %53 = arith.select %49, %51, %52 : vector<24x128xi1>, vector<24x128xf32>
    %54 = vector.shape_cast %28 : vector<24x1xf32> to vector<24x1xf32>
    %55 = vector.broadcast %54 : vector<24x1xf32> to vector<24x128xf32>
    %56 = arith.select %47, %55, %53 : vector<24x128xi1>, vector<24x128xf32>
    %c0_21 = arith.constant 0 : index
    %c0_22 = arith.constant 0 : index
    %57 = vector.load %arg5[%c0_21, %c0_22] : memref<24x128xf32, #tpu.memory_space<vmem>>, vector<24x128xf32>
    tpu.vector_store %arg5[%c0_21, %c0_22], %56 {strides = array<i32>} : memref<24x128xf32, #tpu.memory_space<vmem>>, vector<24x128xf32>,
    return
  }
}

</mosaic_0001>

<bundles_post_ra>
// kernel: progan_discriminator_forward.1
= control target key start
LH: loop header
LB: loop body
LE: loop exit
PB: predicated region body
PF: predicated region fallthrough
CT: control target
= control target key end

     0   :  { %v443_v0 = vmov 0.0|0.0   ;;  %vm444_vm0 = vmmov 0   ;;  %v445_v4 = vmov 0.0   ;;  %vm34_vm1 = vcmask 261120   ;;  %s550_s1 = inlined_call_operand.vmem [shape: f32[32,64], index: 1, kind: input, shape index: {}]   ;;  %s551_s3 = inlined_call_operand.vmem [shape: f32[64,17], index: 3, kind: input, shape index: {}]   ;;  %s552_s0 = inlined_call_operand.vmem [shape: f32[24,32], index: 0, kind: input, shape index: {}]   ;;  %s553_s2 = inlined_call_operand.vmem [shape: f32[1,64], index: 2, kind: input, shape index: {}]   ;;  %s554_s4 = inlined_call_operand.vmem [shape: f32[1,17], index: 4, kind: input, shape index: {}]   ;;  %s555_s5 = inlined_call_operand.vmem [shape: f32[24,128], index: 5, kind: output, shape index: {}]  }
   0x1   :  { %396 = vmatprep.subr.bf16.mxu0 %v443_v0  ;;  %v23_v1 = vld [vmem:[%s550_s1] sm:$0xff]  ;;  %v24_v2 = vld [vmem:[%s550_s1 + $0x8] sm:$0xff]  ;;  %v25_v3 = vld [vmem:[%s550_s1 + $0x10] sm:$0xff]  ;;  %362 = vmatprep.mubr.msk.f32.mxu0 %vm444_vm0, %v445_v4  ;;  %vm148_vm3 = vcmask 523264   ;;  %v446_v39 = vmov 16   ;;  %vm264_vm8 = vcmask 130048  }
   0x2   :  { %v397_v5 = vpack.c.bf16 %v24_v2, %v23_v1  ;;  %v26_v6 = vld [vmem:[%s550_s1 + $0x18] sm:$0xff]  ;;  %402 = vmatprep.subr.bf16.mxu1 %v443_v0  ;;  %387 = vmatprep.mubr.msk.f32.mxu1 %vm444_vm0, %v445_v4  ;;  %v133_v7 = vld [vmem:[%s551_s3] sm:$0xff]  ;;  %v134_v8 = vld [vmem:[%s551_s3 + $0x8] sm:$0xff] }
   0x3   :  { %v400_v9 = vpack.c.bf16 %v26_v6, %v25_v3  ;;  %v403_v10 = vpack.c.bf16 %v134_v8, %v133_v7  ;;  %v135_v11 = vld [vmem:[%s551_s3 + $0x10] sm:$0xff]  ;;  %v136_v12 = vld [vmem:[%s551_s3 + $0x18] sm:$0xff]  ;;  %v137_v14 = vld [vmem:[%s551_s3 + $0x20] sm:$0xff]  ;;  %420 = vset.pattern.permute.xlu1 %v446_v39  ;;  %419 = vset.pattern.permute.xlu0 %v446_v39  ;;  %v447_v6 = vmov 0  }
   0x4   :  { %398 = vmatpush3.bf16.msra.mxu0 %v397_v5  ;;  %v406_v13 = vpack.c.bf16 %v136_v12, %v135_v11  ;;  %v138_v15 = vld [vmem:[%s551_s3 + $0x28] sm:$0xff]  ;;  %v20_v16 = vld [vmem:[%s552_s0] sm:$0xff]  ;;  %v22_v19 = vld [vmem:[%s552_s0 + $0x10] sm:$0xff] }
   0x5   :  { %399 = vmatprep.subr.bf16.mxu0 %v443_v0  ;;  %404 = vmatpush3.bf16.msra.mxu1 %v403_v10  ;;  %v409_v17 = vpack.c.bf16 %v138_v15, %v137_v14  ;;  %v21_v18 = vld [vmem:[%s552_s0 + $0x8] sm:$0xff]  ;;  %v139_v20 = vld [vmem:[%s551_s3 + $0x30] sm:$0xff]  ;;  %v140_v21 = vld [vmem:[%s551_s3 + $0x38] sm:$0xff] }
   0x6   :  { %405 = vmatprep.subr.bf16.mxu1 %v443_v0  ;;  %v412_v22 = vpack.c.bf16 %v140_v21, %v139_v20  ;;  %v328_v23 = vld [vmem:[%s553_s2] ss:$0 sm:$0xff] }
   0x7   :  { %v332_v40 = vld [vmem:[%s554_s4] ss:$0 sm:$0xff] }
   0x8   :  { %401 = vmatpush3.bf16.msra.mxu0 %v400_v9 }
   0x9   :  { %407 = vmatpush3.bf16.msra.mxu1 %v406_v13 }
   0xa   :  { %408 = vmatprep.subr.bf16.mxu1 %v443_v0 }
   0xb   :  { %363 = vmatmul.mubr.msk.f32.vlgmr.msra.gmra.mrb[0].mxu0 %vm34_vm1, %v20_v16 }
   0xc   :  { %365 = vmatprep.mubr.msk.f32.mxu0 %vm444_vm0, %v445_v4 }
   0xd   :  { %410 = vmatpush3.bf16.msra.mxu1 %v409_v17 }
   0xe   :  { %411 = vmatprep.subr.bf16.mxu1 %v443_v0 }
   0xf   :  { %366 = vmatmul.mubr.msk.f32.gmra.mrb[2].mxu0 %vm34_vm1, %v21_v18 }
  0x10   :  { %368 = vmatprep.mubr.msk.f32.mxu0 %vm444_vm0, %v445_v4 }
  0x11   :  { %413 = vmatpush3.bf16.msra.mxu1 %v412_v22 }
  0x13   :  { %369 = vmatmul.mubr.msk.f32.gmra.mrb[4].mxu0 %vm34_vm1, %v22_v19 }
  0xde   :  { %v110_v24 = vpop.f32.mrb[0].mxu0 }
  0xdf   :  { %v111_v25 = vadd.f32 %v328_v23, %v110_v24  ;;  %v364_v26 = vpop.f32.mrb[1].mxu0  ;;  %v281_v24 = vlaneseq }
  0xe1   :  { %vm124_vm2 = vcmp.gt.f32.partialorder %v111_v25, 0.0  ;;  %v127_v27 = vmul.f32 0.2, %v111_v25 }
  0xe2   :  { %v115_v28 = vpop.f32.mrb[2].mxu0 }
  0xe3   :  { %v116_v29 = vadd.f32 %v328_v23, %v115_v28  ;;  %v367_v30 = vpop.f32.mrb[3].mxu0  ;;  %v130_v31 = vsel %vm124_vm2, %v111_v25, %v127_v27  ;;  %v282_v25 = vand.u32 127, %v281_v24 }
  0xe4   :  { %388 = vmatmul.mubr.msk.f32.vlgmr.msra.gmra.mrb[0].mxu1 %vm148_vm3, %v130_v31 }
  0xe5   :  { %vm125_vm4 = vcmp.gt.f32.partialorder %v116_v29, 0.0  ;;  %v128_v32 = vmul.f32 0.2, %v116_v29  ;;  %390 = vmatprep.mubr.msk.f32.mxu1 %vm444_vm0, %v445_v4  ;;  %vm284_vm10 = vcmp.eq.s32.totalorder %v282_v25, 1  ;;  %vm283_vm11 = vcmp.eq.s32.totalorder %v282_v25, 0 }
  0xe6   :  { %v120_v33 = vpop.f32.mrb[4].mxu0 }
  0xe7   :  { %v121_v34 = vadd.f32 %v328_v23, %v120_v33  ;;  %v370_v35 = vpop.f32.mrb[5].mxu0  ;;  %v131_v36 = vsel %vm125_vm4, %v116_v29, %v128_v32 }
  0xe8   :  { %391 = vmatmul.mubr.msk.f32.gmra.mrb[2].mxu1 %vm148_vm3, %v131_v36 }
  0xe9   :  { %vm126_vm5 = vcmp.gt.f32.partialorder %v121_v34, 0.0  ;;  %v129_v37 = vmul.f32 0.2, %v121_v34  ;;  %393 = vmatprep.mubr.msk.f32.mxu1 %vm444_vm0, %v445_v4 }
  0xeb   :  { %v132_v38 = vsel %vm126_vm5, %v121_v34, %v129_v37 }
  0xec   :  { %394 = vmatmul.mubr.msk.f32.gmra.mrb[4].mxu1 %vm148_vm3, %v132_v38 }
 0x1b7   :  { %v224_v41 = vpop.f32.mrb[0].mxu1 }
 0x1b8   :  { %v225_v42 = vadd.f32 %v332_v40, %v224_v41  ;;  %v389_v43 = vpop.f32.mrb[1].mxu1 }
 0x1ba   :  { %v247_v44 = vsub.f32 0.0, %v225_v42  ;;  %v241_v48 = vmul.f32 0.2, %v225_v42  ;;  %vm238_vm6 = vcmp.gt.f32.partialorder %v225_v42, 0.0 }
 0x1bb   :  { %v229_v45 = vpop.f32.mrb[2].mxu1 }
 0x1bc   :  { %v230_v46 = vadd.f32 %v332_v40, %v229_v45  ;;  %v392_v47 = vpop.f32.mrb[3].mxu1  ;;  %v250_v49 = vmul.f32 1.442695, %v247_v44  ;;  %v244_v56 = vsel %vm238_vm6, %v225_v42, %v241_v48 }
 0x1be   :  { %v248_v50 = vsub.f32 0.0, %v230_v46  ;;  %vm239_vm7 = vcmp.gt.f32.partialorder %v230_v46, 0.0  ;;  %v242_v51 = vmul.f32 0.2, %v230_v46  ;;  %423 = vpow2.f32 %v250_v49 }
 0x1bf   :  { %v234_v52 = vpop.f32.mrb[4].mxu1 }
 0x1c0   :  { %v252_v53 = vmul.f32 1.442695, %v248_v50  ;;  %v235_v54 = vadd.f32 %v332_v40, %v234_v52  ;;  %v395_v55 = vpop.f32.mrb[5].mxu1  ;;  %v245_v57 = vsel %vm239_vm7, %v230_v46, %v242_v51 }
 0x1c1   :  { %v262_v58 = vmul.f32 %v245_v57, %v244_v56 }
 0x1c2   :  { %425 = vpow2.f32 %v252_v53  ;;  %vm240_vm9 = vcmp.gt.f32.partialorder %v235_v54, 0.0  ;;  %v243_v59 = vmul.f32 0.2, %v235_v54  ;;  %v249_v9 = vsub.f32 0.0, %v235_v54 }
 0x1c3   :  { %v265_v60 = vsel %vm264_vm8, %v262_v58, 0.0 }
 0x1c4   :  { %266 = vadd.xlane.f32.xlu0 %v265_v60  ;;  %v246_v61 = vsel %vm240_vm9, %v235_v54, %v243_v59  ;;  %v254_v13 = vmul.f32 1.442695, %v249_v9 }
 0x1c5   :  { %v263_v62 = vmul.f32 %v246_v61, %v244_v56 }
 0x1c7   :  { %v268_v63 = vsel %vm264_vm8, %v263_v62, 0.0 }
 0x1c8   :  { %269 = vadd.xlane.f32.xlu0 %v268_v63  ;;  %v424_v0 = vpop.eup %423 }
 0x1c9   :  { %v256_v3 = vadd.f32 1.0, %v424_v0 }
 0x1cc   :  { %v426_v1 = vpop.eup %425 }
 0x1cd   :  { %v257_v2 = vadd.f32 1.0, %v426_v1 }
 0x1cf   :  { %427 = vrcp.f32 %v257_v2 }
 0x1d0   :  { %429 = vrcp.f32 %v256_v3 }
 0x1d9   :  { %v428_v4 = vpop.eup %427 }
 0x1da   :  { %310 = vperm.xlu1 %420, %v428_v4   ;;  %v430_v5 = vpop.eup %429 }
 0x1de   :  { %305 = vperm.xlu0 %419, %v430_v5   ;;  %421 = vset.pattern.permute.xlu1 %v447_v6 }
 0x251   :  { %v267_v7 = vpop.xlane.xlu0 %266 }
 0x252   :  { %v271_v8 = vsub.f32 0.0, %v267_v7 }
 0x254   :  { %v273_v10 = vmul.f32 1.442695, %v271_v8 }
 0x255   :  { %v270_v11 = vpop.xlane.xlu0 %269 }
 0x256   :  { %431 = vpow2.f32 %v273_v10  ;;  %v272_v12 = vsub.f32 0.0, %v270_v11 }
 0x258   :  { %v275_v14 = vmul.f32 1.442695, %v272_v12 }
 0x259   :  { %v311_v26 = vpop.permute.xlu1 %310 }
 0x25a   :  { %433 = vpow2.f32 %v275_v14 }
 0x25b   :  { %435 = vpow2.f32 %v254_v13 }
 0x25d   :  { %v306_v28 = vpop.permute.xlu0 %305 }
 0x260   :  { %v432_v15 = vpop.eup %431 }
 0x261   :  { %v277_v16 = vadd.f32 1.0, %v432_v15 }
 0x263   :  { %437 = vrcp.f32 %v277_v16 }
 0x264   :  { %v434_v17 = vpop.eup %433 }
 0x265   :  { %v436_v18 = vpop.eup %435  ;;  %v278_v19 = vadd.f32 1.0, %v434_v17 }
 0x266   :  { %v258_v20 = vadd.f32 1.0, %v436_v18 }
 0x267   :  { %439 = vrcp.f32 %v278_v19 }
 0x268   :  { %441 = vrcp.f32 %v258_v20 }
 0x26d   :  { %v438_v21 = vpop.eup %437 }
 0x26e   :  { %287 = vperm.xlu1 %421, %v438_v21  }
 0x271   :  { %v440_v22 = vpop.eup %439 }
 0x272   :  { %292 = vperm.xlu1 %421, %v440_v22   ;;  %v442_v23 = vpop.eup %441 }
 0x276   :  { %422 = vset.pattern.permute.xlu1 %v446_v39 }
 0x277   :  { %315 = vperm.xlu1 %422, %v442_v23  }
 0x2ed   :  { %v288_v27 = vpop.permute.xlu1 %287 }
 0x2ee   :  { %v300_v29 = vsel %vm284_vm10, %v288_v27, 0.0 }
 0x2ef   :  { %v318_v30 = vsel %vm283_vm11, %v306_v28, %v300_v29 }
 0x2f0   :  { %321 = vst [vmem:[%s555_s5] sm:$0xff] %v318_v30 }
 0x2f1   :  { %v293_v31 = vpop.permute.xlu1 %292 }
 0x2f2   :  { %v301_v32 = vsel %vm284_vm10, %v293_v31, 0.0 }
 0x2f3   :  { %v319_v33 = vsel %vm283_vm11, %v311_v26, %v301_v32 }
 0x2f4   :  { %322 = vst [vmem:[%s555_s5 + $0x8] sm:$0xff] %v319_v33 }
 0x2f6   :  { %v316_v34 = vpop.permute.xlu1 %315 }
 0x2f7   :  { %v320_v35 = vsel %vm283_vm11, %v316_v34, 0.0 }
 0x2f8   :  { %323 = vst [vmem:[%s555_s5 + $0x10] sm:$0xff] %v320_v35 }

</bundles_post_ra>
